<compile_context>
chip_gen: v6e
topology: v6e:2x2x1
jax: 0.10.0
libtpu: 0.0.40
codegen_flags: <defaults>
</compile_context>

<pallas_src>
import functools
import math

import jax
import jax.numpy as jnp
from jax.experimental import pallas as pl
from jax.experimental.pallas import tpu as pltpu

LOG_2PI = math.log(2.0 * math.pi)
EPS = 1e-6


def _softplus_std(logscale):
    """std = softplus(logscale - 5.0) + eps  (numerically stable softplus)."""
    z = logscale - 5.0
    return jnp.maximum(z, 0.0) + jnp.log1p(jnp.exp(-jnp.abs(z))) + EPS


def _log_prob_diff(x, xm, xls, y, ym, yls):
    """Per-element Normal log-prob difference lp_p(x) - lp_q(y), fused.

    The -0.5*log(2*pi) constants cancel; -log(sx) + log(sy) folds into a
    single log(sy * rcp_x), reusing the reciprocal already needed for dx.
    Inputs are upcast to f32, so bf16 activations are accepted as-is.
    """
    x = x.astype(jnp.float32)
    xm = xm.astype(jnp.float32)
    xls = xls.astype(jnp.float32)
    y = y.astype(jnp.float32)
    ym = ym.astype(jnp.float32)
    yls = yls.astype(jnp.float32)

    sx = _softplus_std(xls)
    sy = _softplus_std(yls)
    rcp_x = 1.0 / sx
    rcp_y = 1.0 / sy
    dx = (x - xm) * rcp_x
    dy = (y - ym) * rcp_y
    return 0.5 * (dy * dy - dx * dx) + jnp.log(sy * rcp_x)


def _loss_kernel(x_ref, xm_ref, xls_ref, y_ref, ym_ref, yls_ref, out_ref,
                 *, batch, tile_b, d, need_mask):
    n_groups = tile_b // 8
    fold_cols = (d % 128 == 0) and (d > 128)
    # Modest unroll, sized so live input vregs per unrolled body stay small.
    unroll = max(1, min(8, 32 // (6 * (-(-d // 128)))))
    unroll = min(unroll, n_groups)

    block_start = pl.program_id(0) * tile_b
    # (8, 1) sublane iota, hoisted out of the loop; broadcast inside the where.
    sub_row = jax.lax.broadcasted_iota(jnp.int32, (8, 1), 0)

    def partial_sum(masked):
        def body(g, acc):
            r0 = pl.multiple_of(g * 8, 8)
            sl = pl.ds(r0, 8)
            diff = _log_prob_diff(x_ref[sl, :], xm_ref[sl, :], xls_ref[sl, :],
                                  y_ref[sl, :], ym_ref[sl, :], yls_ref[sl, :])
            if masked:
                # SELECT mask (never arithmetic masking): garbage rows of a
                # partial last block may hold Inf/NaN; jnp.where does not
                # propagate them from the unselected branch.
                valid = (block_start + g * 8 + sub_row) < batch
                diff = jnp.where(valid, diff, 0.0)
            return acc + diff

        acc = jax.lax.fori_loop(0, n_groups, body,
                                jnp.zeros((8, d), jnp.float32), unroll=unroll)
        if fold_cols:
            # Fold the (8, D) partial down to a fixed (8, 128) slab with
            # static 128-lane slice adds (pure VPU, no relayout).
            folded = acc[:, 0:128]
            for c in range(1, d // 128):
                folded = folded + acc[:, c * 128:(c + 1) * 128]
            return folded
        return acc

    if need_mask:
        # Only the final grid block pays for iota/compare/select.
        is_last = pl.program_id(0) == pl.num_programs(0) - 1

        @pl.when(is_last)
        def _():
            out_ref[...] = partial_sum(True)

        @pl.when(jnp.logical_not(is_last))
        def _():
            out_ref[...] = partial_sum(False)
    else:
        out_ref[...] = partial_sum(False)


def _vmem_capacity_bytes():
    try:
        info = pltpu.get_tpu_info()
        cap = getattr(info, "vmem_capacity_bytes", None)
        if cap:
            return int(cap)
    except Exception:
        pass
    return 64 << 20  # conservative fallback (v7x per-TC physical VMEM)


def _choose_tile_b(B, D):
    d_pad = -(-D // 128) * 128
    # Double-buffered input footprint: <= 1/4 of physical VMEM, <= 24 MiB
    # (i.e. 16 MiB on v7x's 64 MiB parts, 24 MiB on 128 MiB v5e/v6e).
    budget = min(_vmem_capacity_bytes() // 4, 24 << 20)
    per_row = 6 * 2 * d_pad * 4
    tile_b = max(8, min(budget // per_row, 4096))
    tile_b -= tile_b % 8

    # Tiny batches collapse to a single block.
    b_pad8 = -(-B // 8) * 8
    if b_pad8 <= tile_b:
        tile_b = b_pad8

    # v7x has 2 TensorCores sharing HBM: keep the "parallel" grid axis at
    # >= 2 (ideally >= 4) steps for medium batches so neither core idles.
    while -(-B // tile_b) < 4 and tile_b >= 1024:
        tile_b = (tile_b // 2) - ((tile_b // 2) % 8)
    return max(tile_b, 8)


def _vmem_limit_bytes(tile_b, D, out_d):
    d_pad = -(-D // 128) * 128
    od_pad = -(-out_d // 128) * 128
    in_bytes = 6 * 2 * tile_b * d_pad * 4        # 6 inputs, double-buffered
    out_bytes = 2 * 8 * od_pad * 4               # tiny partial output
    return int(max(in_bytes + out_bytes + (2 << 20), 16 << 20))


def log_mvn_diff_loss(x, xmean, xlogscale, y, ymean, ylogscale,
                      reduction="mean", tile_b=None):
    B, D = x.shape
    if tile_b is None:
        tile_b = _choose_tile_b(B, D)
    assert tile_b % 8 == 0, "batch tile must be a multiple of 8 (sublane)"

    grid = -(-B // tile_b)                    # cdiv
    need_mask = (grid * tile_b) != B          # last block is partial -> mask it
    out_d = 128 if (D % 128 == 0) else D

    in_spec = pl.BlockSpec((tile_b, D), lambda i: (i, 0))

    partials = pl.pallas_call(
        functools.partial(_loss_kernel, batch=B, tile_b=tile_b, d=D,
                          need_mask=need_mask),
        out_shape=jax.ShapeDtypeStruct((grid * 8, out_d), jnp.float32),
        grid_spec=pltpu.PrefetchScalarGridSpec(
            num_scalar_prefetch=0,
            grid=(grid,),
            in_specs=[in_spec] * 6,
            out_specs=pl.BlockSpec((8, out_d), lambda i: (i, 0)),
        ),
        compiler_params=pltpu.CompilerParams(
            # TODO(synk): switch to pltpu.CORE_PARALLEL if profiling shows v7x
            # does not split this axis across its two TensorCores; consider
            # pipeline_mode=pl.Buffered(3) only if xprof shows exposed DMA.
            dimension_semantics=("parallel",),
            vmem_limit_bytes=_vmem_limit_bytes(tile_b, D, out_d),
        ),
        cost_estimate=pl.CostEstimate(
            flops=int(30 * B * D),
            transcendentals=int(5 * B * D),
            bytes_accessed=int(6 * B * D * 4 + grid * 8 * out_d * 4),
        ),
    )(x, xmean, xlogscale, y, ymean, ylogscale)

    total = jnp.sum(partials)
    divisor = float(B) if reduction == "mean" else 1.0
    return total / divisor


def _reference(x, xmean, xlogscale, y, ymean, ylogscale, reduction="mean"):
    def log_prob(value, mean, logscale):
        std = jax.nn.softplus(logscale - 5.0) + EPS
        lp = -0.5 * ((value - mean) / std) ** 2 - jnp.log(std) - 0.5 * LOG_2PI
        return jnp.sum(lp, axis=-1)

    diff = log_prob(x, xmean, xlogscale) - log_prob(y, ymean, ylogscale)
    return jnp.mean(diff) if reduction == "mean" else jnp.sum(diff)


def _make_inputs(key, B, D):
    kx, kxm, kxl, ky, kym, kyl = jax.random.split(key, 6)
    # logscales centered near 4 keep stddev = softplus(ls - 5) in an O(0.1-1),
    # well-conditioned regime for the f32 comparison against the reference.
    x = jax.random.normal(kx, (B, D), jnp.float32)
    xmean = jax.random.normal(kxm, (B, D), jnp.float32)
    xlogscale = 4.0 + 0.5 * jax.random.normal(kxl, (B, D), jnp.float32)
    y = jax.random.normal(ky, (B, D), jnp.float32)
    ymean = jax.random.normal(kym, (B, D), jnp.float32)
    ylogscale = 4.0 + 0.5 * jax.random.normal(kyl, (B, D), jnp.float32)
    return x, xmean, xlogscale, y, ymean, ylogscale


if __name__ == "__main__":
    key = jax.random.PRNGKey(0)
    cases = [
        # (B, D, reduction, tile_b override)
        (16, 128, "mean", None),   # tiny: single-block fast path
        (20, 128, "sum", None),    # ragged single block: partial DMA + mask
        (64, 128, "mean", 16),     # multi-block parallel grid (4 blocks)
        (52, 128, "sum", 16),      # multi-block, mask on the LAST block only
        (24, 256, "mean", None),   # D > 128: (8,128) column-folded partials
    ]
    for idx, (B, D, red, tb) in enumerate(cases):
        key, sub = jax.random.split(key)
        inputs = _make_inputs(sub, B, D)
        loss = log_mvn_diff_loss(*inputs, reduction=red, tile_b=tb)
        loss = jax.block_until_ready(loss)
        ref = _reference(*inputs, reduction=red)
        assert jnp.allclose(loss, ref, rtol=1e-4, atol=1e-3), (idx, loss, ref)

    print("KERNEL_OK")
</pallas_src>

<mosaic_0001>
module attributes {stable_mosaic.version = 11 : i64} {
  func.func @_loss_kernel(%arg0: i32, %arg1: memref<16x128xf32, #tpu.memory_space<vmem>>, %arg2: memref<16x128xf32, #tpu.memory_space<vmem>>, %arg3: memref<16x128xf32, #tpu.memory_space<vmem>>, %arg4: memref<16x128xf32, #tpu.memory_space<vmem>>, %arg5: memref<16x128xf32, #tpu.memory_space<vmem>>, %arg6: memref<16x128xf32, #tpu.memory_space<vmem>>, %arg7: memref<8x128xf32, #tpu.memory_space<vmem>>) attributes {dimension_semantics = [#tpu.dimension_semantics<parallel>], iteration_bounds = array<i64: 1>, scalar_prefetch = 0 : i64, scratch_operands = 0 : i64, tpu.core_type = #tpu.core_type<tc>, window_params = [{transform_indices = @transform_0, window_bounds = array<i64: 16, 128>}, {transform_indices = @transform_1, window_bounds = array<i64: 16, 128>}, {transform_indices = @transform_2, window_bounds = array<i64: 16, 128>}, {transform_indices = @transform_3, window_bounds = array<i64: 16, 128>}, {transform_indices = @transform_4, window_bounds = array<i64: 16, 128>}, {transform_indices = @transform_5, window_bounds = array<i64: 16, 128>}, {transform_indices = @transform_6, window_bounds = array<i64: 8, 128>}]} {
    %cst = arith.constant 0.000000e+00 : f32
    %0 = vector.broadcast %cst : f32 to vector<8x128xf32>
    %c0_i32 = arith.constant 0 : i32
    %c8_i32 = arith.constant 8 : i32
    %1 = arith.muli %c0_i32, %c8_i32 : i32
    %2 = tpu.assume_multiple %1, 8 : i32
    %3 = arith.index_cast %2 : i32 to index
    %c0 = arith.constant 0 : index
    %4 = vector.load %arg1[%3, %c0] : memref<16x128xf32, #tpu.memory_space<vmem>>, vector<8x128xf32>
    %5 = arith.index_cast %2 : i32 to index
    %c0_0 = arith.constant 0 : index
    %6 = vector.load %arg2[%5, %c0_0] : memref<16x128xf32, #tpu.memory_space<vmem>>, vector<8x128xf32>
    %7 = arith.index_cast %2 : i32 to index
    %c0_1 = arith.constant 0 : index
    %8 = vector.load %arg3[%7, %c0_1] : memref<16x128xf32, #tpu.memory_space<vmem>>, vector<8x128xf32>
    %9 = arith.index_cast %2 : i32 to index
    %c0_2 = arith.constant 0 : index
    %10 = vector.load %arg4[%9, %c0_2] : memref<16x128xf32, #tpu.memory_space<vmem>>, vector<8x128xf32>
    %11 = arith.index_cast %2 : i32 to index
    %c0_3 = arith.constant 0 : index
    %12 = vector.load %arg5[%11, %c0_3] : memref<16x128xf32, #tpu.memory_space<vmem>>, vector<8x128xf32>
    %13 = arith.index_cast %2 : i32 to index
    %c0_4 = arith.constant 0 : index
    %14 = vector.load %arg6[%13, %c0_4] : memref<16x128xf32, #tpu.memory_space<vmem>>, vector<8x128xf32>
    %cst_5 = arith.constant 5.000000e+00 : f32
    %15 = vector.broadcast %cst_5 : f32 to vector<8x128xf32>
    %16 = arith.subf %8, %15 : vector<8x128xf32>
    %cst_6 = arith.constant 0.000000e+00 : f32
    %17 = vector.broadcast %cst_6 : f32 to vector<8x128xf32>
    %18 = arith.maximumf %16, %17 : vector<8x128xf32>
    %19 = math.absf %16 : vector<8x128xf32>
    %cst_7 = arith.constant 0.000000e+00 : f32
    %20 = vector.broadcast %cst_7 : f32 to vector<8x128xf32>
    %21 = arith.subf %20, %19 : vector<8x128xf32>
    %22 = math.exp %21 : vector<8x128xf32>
    %23 = math.log1p %22 : vector<8x128xf32>
    %24 = arith.addf %18, %23 : vector<8x128xf32>
    %cst_8 = arith.constant 9.99999997E-7 : f32
    %25 = vector.broadcast %cst_8 : f32 to vector<8x128xf32>
    %26 = arith.addf %24, %25 : vector<8x128xf32>
    %cst_9 = arith.constant 5.000000e+00 : f32
    %27 = vector.broadcast %cst_9 : f32 to vector<8x128xf32>
    %28 = arith.subf %14, %27 : vector<8x128xf32>
    %cst_10 = arith.constant 0.000000e+00 : f32
    %29 = vector.broadcast %cst_10 : f32 to vector<8x128xf32>
    %30 = arith.maximumf %28, %29 : vector<8x128xf32>
    %31 = math.absf %28 : vector<8x128xf32>
    %cst_11 = arith.constant 0.000000e+00 : f32
    %32 = vector.broadcast %cst_11 : f32 to vector<8x128xf32>
    %33 = arith.subf %32, %31 : vector<8x128xf32>
    %34 = math.exp %33 : vector<8x128xf32>
    %35 = math.log1p %34 : vector<8x128xf32>
    %36 = arith.addf %30, %35 : vector<8x128xf32>
    %cst_12 = arith.constant 9.99999997E-7 : f32
    %37 = vector.broadcast %cst_12 : f32 to vector<8x128xf32>
    %38 = arith.addf %36, %37 : vector<8x128xf32>
    %cst_13 = arith.constant 1.000000e+00 : f32
    %39 = vector.broadcast %cst_13 : f32 to vector<8x128xf32>
    %40 = arith.divf %39, %26 : vector<8x128xf32>
    %cst_14 = arith.constant 1.000000e+00 : f32
    %41 = vector.broadcast %cst_14 : f32 to vector<8x128xf32>
    %42 = arith.divf %41, %38 : vector<8x128xf32>
    %43 = arith.subf %4, %6 : vector<8x128xf32>
    %44 = arith.mulf %43, %40 : vector<8x128xf32>
    %45 = arith.subf %10, %12 : vector<8x128xf32>
    %46 = arith.mulf %45, %42 : vector<8x128xf32>
    %47 = arith.mulf %46, %46 : vector<8x128xf32>
    %48 = arith.mulf %44, %44 : vector<8x128xf32>
    %49 = arith.subf %47, %48 : vector<8x128xf32>
    %cst_15 = arith.constant 5.000000e-01 : f32
    %50 = vector.broadcast %cst_15 : f32 to vector<8x128xf32>
    %51 = arith.mulf %50, %49 : vector<8x128xf32>
    %52 = arith.mulf %38, %40 : vector<8x128xf32>
    %53 = math.log %52 : vector<8x128xf32>
    %54 = arith.addf %51, %53 : vector<8x128xf32>
    %55 = arith.addf %0, %54 : vector<8x128xf32>
    %c1_i32 = arith.constant 1 : i32
    %c8_i32_16 = arith.constant 8 : i32
    %56 = arith.muli %c1_i32, %c8_i32_16 : i32
    %57 = tpu.assume_multiple %56, 8 : i32
    %58 = arith.index_cast %57 : i32 to index
    %c0_17 = arith.constant 0 : index
    %59 = vector.load %arg1[%58, %c0_17] : memref<16x128xf32, #tpu.memory_space<vmem>>, vector<8x128xf32>
    %60 = arith.index_cast %57 : i32 to index
    %c0_18 = arith.constant 0 : index
    %61 = vector.load %arg2[%60, %c0_18] : memref<16x128xf32, #tpu.memory_space<vmem>>, vector<8x128xf32>
    %62 = arith.index_cast %57 : i32 to index
    %c0_19 = arith.constant 0 : index
    %63 = vector.load %arg3[%62, %c0_19] : memref<16x128xf32, #tpu.memory_space<vmem>>, vector<8x128xf32>
    %64 = arith.index_cast %57 : i32 to index
    %c0_20 = arith.constant 0 : index
    %65 = vector.load %arg4[%64, %c0_20] : memref<16x128xf32, #tpu.memory_space<vmem>>, vector<8x128xf32>
    %66 = arith.index_cast %57 : i32 to index
    %c0_21 = arith.constant 0 : index
    %67 = vector.load %arg5[%66, %c0_21] : memref<16x128xf32, #tpu.memory_space<vmem>>, vector<8x128xf32>
    %68 = arith.index_cast %57 : i32 to index
    %c0_22 = arith.constant 0 : index
    %69 = vector.load %arg6[%68, %c0_22] : memref<16x128xf32, #tpu.memory_space<vmem>>, vector<8x128xf32>
    %cst_23 = arith.constant 5.000000e+00 : f32
    %70 = vector.broadcast %cst_23 : f32 to vector<8x128xf32>
    %71 = arith.subf %63, %70 : vector<8x128xf32>
    %cst_24 = arith.constant 0.000000e+00 : f32
    %72 = vector.broadcast %cst_24 : f32 to vector<8x128xf32>
    %73 = arith.maximumf %71, %72 : vector<8x128xf32>
    %74 = math.absf %71 : vector<8x128xf32>
    %cst_25 = arith.constant 0.000000e+00 : f32
    %75 = vector.broadcast %cst_25 : f32 to vector<8x128xf32>
    %76 = arith.subf %75, %74 : vector<8x128xf32>
    %77 = math.exp %76 : vector<8x128xf32>
    %78 = math.log1p %77 : vector<8x128xf32>
    %79 = arith.addf %73, %78 : vector<8x128xf32>
    %cst_26 = arith.constant 9.99999997E-7 : f32
    %80 = vector.broadcast %cst_26 : f32 to vector<8x128xf32>
    %81 = arith.addf %79, %80 : vector<8x128xf32>
    %cst_27 = arith.constant 5.000000e+00 : f32
    %82 = vector.broadcast %cst_27 : f32 to vector<8x128xf32>
    %83 = arith.subf %69, %82 : vector<8x128xf32>
    %cst_28 = arith.constant 0.000000e+00 : f32
    %84 = vector.broadcast %cst_28 : f32 to vector<8x128xf32>
    %85 = arith.maximumf %83, %84 : vector<8x128xf32>
    %86 = math.absf %83 : vector<8x128xf32>
    %cst_29 = arith.constant 0.000000e+00 : f32
    %87 = vector.broadcast %cst_29 : f32 to vector<8x128xf32>
    %88 = arith.subf %87, %86 : vector<8x128xf32>
    %89 = math.exp %88 : vector<8x128xf32>
    %90 = math.log1p %89 : vector<8x128xf32>
    %91 = arith.addf %85, %90 : vector<8x128xf32>
    %cst_30 = arith.constant 9.99999997E-7 : f32
    %92 = vector.broadcast %cst_30 : f32 to vector<8x128xf32>
    %93 = arith.addf %91, %92 : vector<8x128xf32>
    %cst_31 = arith.constant 1.000000e+00 : f32
    %94 = vector.broadcast %cst_31 : f32 to vector<8x128xf32>
    %95 = arith.divf %94, %81 : vector<8x128xf32>
    %cst_32 = arith.constant 1.000000e+00 : f32
    %96 = vector.broadcast %cst_32 : f32 to vector<8x128xf32>
    %97 = arith.divf %96, %93 : vector<8x128xf32>
    %98 = arith.subf %59, %61 : vector<8x128xf32>
    %99 = arith.mulf %98, %95 : vector<8x128xf32>
    %100 = arith.subf %65, %67 : vector<8x128xf32>
    %101 = arith.mulf %100, %97 : vector<8x128xf32>
    %102 = arith.mulf %101, %101 : vector<8x128xf32>
    %103 = arith.mulf %99, %99 : vector<8x128xf32>
    %104 = arith.subf %102, %103 : vector<8x128xf32>
    %cst_33 = arith.constant 5.000000e-01 : f32
    %105 = vector.broadcast %cst_33 : f32 to vector<8x128xf32>
    %106 = arith.mulf %105, %104 : vector<8x128xf32>
    %107 = arith.mulf %93, %95 : vector<8x128xf32>
    %108 = math.log %107 : vector<8x128xf32>
    %109 = arith.addf %106, %108 : vector<8x128xf32>
    %110 = arith.addf %55, %109 : vector<8x128xf32>
    %c2_i32 = arith.constant 2 : i32
    %c0_34 = arith.constant 0 : index
    %c0_35 = arith.constant 0 : index
    %111 = vector.load %arg7[%c0_34, %c0_35] : memref<8x128xf32, #tpu.memory_space<vmem>>, vector<8x128xf32>
    tpu.vector_store %arg7[%c0_34, %c0_35], %110 {strides = array<i32>} : memref<8x128xf32, #tpu.memory_space<vmem>>, vector<8x128xf32>,
    return
  }
  func.func @transform_0(%arg0: i32) -> (i32, i32) {
    %c0_i32 = arith.constant 0 : i32
    %c0_i32_0 = arith.constant 0 : i32
    return %arg0, %c0_i32 : i32, i32
  }
  func.func @transform_1(%arg0: i32) -> (i32, i32) {
    %c0_i32 = arith.constant 0 : i32
    %c0_i32_0 = arith.constant 0 : i32
    return %arg0, %c0_i32 : i32, i32
  }
  func.func @transform_2(%arg0: i32) -> (i32, i32) {
    %c0_i32 = arith.constant 0 : i32
    %c0_i32_0 = arith.constant 0 : i32
    return %arg0, %c0_i32 : i32, i32
  }
  func.func @transform_3(%arg0: i32) -> (i32, i32) {
    %c0_i32 = arith.constant 0 : i32
    %c0_i32_0 = arith.constant 0 : i32
    return %arg0, %c0_i32 : i32, i32
  }
  func.func @transform_4(%arg0: i32) -> (i32, i32) {
    %c0_i32 = arith.constant 0 : i32
    %c0_i32_0 = arith.constant 0 : i32
    return %arg0, %c0_i32 : i32, i32
  }
  func.func @transform_5(%arg0: i32) -> (i32, i32) {
    %c0_i32 = arith.constant 0 : i32
    %c0_i32_0 = arith.constant 0 : i32
    return %arg0, %c0_i32 : i32, i32
  }
  func.func @transform_6(%arg0: i32) -> (i32, i32) {
    %c0_i32 = arith.constant 0 : i32
    %c0_i32_0 = arith.constant 0 : i32
    return %arg0, %c0_i32 : i32, i32
  }
}

</mosaic_0001>

<bundles_post_ra>
// kernel: tpu_custom_call.1
= control target key start
LH: loop header
LB: loop body
LE: loop exit
PB: predicated region body
PF: predicated region fallthrough
CT: control target
= control target key end

     0   :  { %11 = vsyncpa [#allocation3], 0  ;;  %s541_s0 = inlined_call_operand.hbm [shape: f32[16,128], index: 0, kind: input, shape index: {}]   ;;  %s542_s1 = inlined_call_operand.hbm [shape: f32[16,128], index: 1, kind: input, shape index: {}]   ;;  %s543_s2 = inlined_call_operand.hbm [shape: f32[16,128], index: 2, kind: input, shape index: {}]   ;;  %s544_s3 = inlined_call_operand.hbm [shape: f32[16,128], index: 3, kind: input, shape index: {}]   ;;  %s545_s4 = inlined_call_operand.hbm [shape: f32[16,128], index: 4, kind: input, shape index: {}]   ;;  %s546_s5 = inlined_call_operand.hbm [shape: f32[16,128], index: 5, kind: input, shape index: {}]   ;;  %s547_s6 = inlined_call_operand.hbm [shape: f32[8,128], index: 6, kind: output, shape index: {}]  }
   0x1   :  { %12 = vsyncpa [#allocation6], 0 }
   0x2   :  { %13 = vsyncpa [#allocation9], 0 }
   0x3   :  { %14 = vsyncpa [#allocation12], 0 }
   0x4   :  { %15 = vsyncpa [#allocation4], 0  ;;  %s436_s21 = smov [#allocation5]   ;;  %s437_s23 = smov [#allocation8]  }
   0x5   :  { %s33_s22 = sshll.u32 %s436_s21, 4  ;;  %s57_s24 = sshll.u32 %s437_s23, 4  ;;  %s34_s22 = int_to_ptr.vmem [resolvable:$true] %s33_s22  ;;  %s58_s24 = int_to_ptr.vmem [resolvable:$true] %s57_s24 }
   0x6   :  { %s294_s25 = scalar_lea.vmem %s34_s22, 256  ;;  %p299_p1 = scmp.lt.s32.totalorder %s34_s22, %s34_s22 }
   0x7   :  { %p295_p0 = scmp.ne.s32.totalorder %s34_s22, %s294_s25  ;;  %p300_p2 = scmp.lt.s32.totalorder %s294_s25, %s294_s25 }
   0x9   :  { %p301_p3 = por %p300_p2, %p299_p1 }
   0xb   :  { %p302_p4 = pnand %p301_p3, %p295_p0 }
   0xd   :  { %305 = shalt.err (!%p302_p4)
}
   0xe   :  { %s438_s26 = smov 128   ;;  %s439_s27 = smov 8  }
   0xf   :  { %39 = dma.hbm_to_vmem [thread:$0]  %s542_s1, 256, %s34_s22, [#allocation6], %s438_s26, %s438_s26, %s439_s27  }
  0x10   :  { %s314_s30 = scalar_lea.vmem %s58_s24, 256  ;;  %p319_p6 = scmp.lt.s32.totalorder %s58_s24, %s58_s24 }
  0x11   :  { %p315_p5 = scmp.ne.s32.totalorder %s58_s24, %s314_s30  ;;  %p320_p7 = scmp.lt.s32.totalorder %s314_s30, %s314_s30 }
  0x13   :  { %p321_p8 = por %p320_p7, %p319_p6 }
  0x15   :  { %p322_p9 = pnand %p321_p8, %p315_p5 }
  0x17   :  { %325 = shalt.err (!%p322_p9)
}
  0x18   :  { %63 = dma.hbm_to_vmem [thread:$0]  %s544_s3, 256, %s58_s24, [#allocation9], %s438_s26, %s438_s26, %s439_s27  }
  0x19   :  { %s440_s9 = smov [#allocation2]   ;;  %s441_s11 = smov [#allocation7]  }
  0x1a   :  { %s21_s10 = sshll.u32 %s440_s9, 4  ;;  %s45_s12 = sshll.u32 %s441_s11, 4  ;;  %s22_s10 = int_to_ptr.vmem [resolvable:$true] %s21_s10  ;;  %s46_s12 = int_to_ptr.vmem [resolvable:$true] %s45_s12 }
  0x1b   :  { %s334_s1 = scalar_lea.vmem %s22_s10, 256  ;;  %p339_p11 = scmp.lt.s32.totalorder %s22_s10, %s22_s10 }
  0x1c   :  { %p335_p10 = scmp.ne.s32.totalorder %s22_s10, %s334_s1  ;;  %p340_p12 = scmp.lt.s32.totalorder %s334_s1, %s334_s1 }
  0x1e   :  { %p341_p13 = por %p340_p12, %p339_p11 }
  0x20   :  { %p342_p0 = pnand %p341_p13, %p335_p10 }
  0x22   :  { %345 = shalt.err (!%p342_p0)
}
  0x23   :  { %27 = dma.hbm_to_vmem [thread:$0]  %s541_s0, 256, %s22_s10, [#allocation3], %s438_s26, %s438_s26, %s439_s27  }
  0x24   :  { %s354_s3 = scalar_lea.vmem %s46_s12, 256  ;;  %p359_p2 = scmp.lt.s32.totalorder %s46_s12, %s46_s12 }
  0x25   :  { %p355_p1 = scmp.ne.s32.totalorder %s46_s12, %s354_s3  ;;  %p360_p3 = scmp.lt.s32.totalorder %s354_s3, %s354_s3 }
  0x27   :  { %p361_p4 = por %p360_p3, %p359_p2 }
  0x29   :  { %p362_p5 = pnand %p361_p4, %p355_p1 }
  0x2b   :  { %365 = shalt.err (!%p362_p5)
}
  0x2c   :  { %51 = dma.hbm_to_vmem [thread:$0]  %s543_s2, 256, %s46_s12, [#allocation6], %s438_s26, %s438_s26, %s439_s27  }
  0x2d   :  { %s442_s17 = smov [#allocation10]   ;;  %s443_s19 = smov [#allocation11]  }
  0x2e   :  { %s69_s18 = sshll.u32 %s442_s17, 4  ;;  %s81_s20 = sshll.u32 %s443_s19, 4  ;;  %s70_s18 = int_to_ptr.vmem [resolvable:$true] %s69_s18  ;;  %s82_s20 = int_to_ptr.vmem [resolvable:$true] %s81_s20 }
  0x2f   :  { %s374_s0 = scalar_lea.vmem %s70_s18, 256  ;;  %p379_p7 = scmp.lt.s32.totalorder %s70_s18, %s70_s18 }
  0x30   :  { %p375_p6 = scmp.ne.s32.totalorder %s70_s18, %s374_s0  ;;  %p380_p8 = scmp.lt.s32.totalorder %s374_s0, %s374_s0 }
  0x32   :  { %p381_p9 = por %p380_p8, %p379_p7 }
  0x34   :  { %p382_p10 = pnand %p381_p9, %p375_p6 }
  0x36   :  { %385 = shalt.err (!%p382_p10)
}
  0x37   :  { %75 = dma.hbm_to_vmem [thread:$0]  %s545_s4, 256, %s70_s18, [#allocation9], %s438_s26, %s438_s26, %s439_s27  }
  0x38   :  { %s394_s2 = scalar_lea.vmem %s82_s20, 256  ;;  %p399_p12 = scmp.lt.s32.totalorder %s82_s20, %s82_s20 }
  0x39   :  { %p395_p11 = scmp.ne.s32.totalorder %s82_s20, %s394_s2  ;;  %p400_p13 = scmp.lt.s32.totalorder %s394_s2, %s394_s2 }
  0x3b   :  { %p401_p0 = por %p400_p13, %p399_p12 }
  0x3d   :  { %p402_p1 = pnand %p401_p0, %p395_p11 }
  0x3f   :  { %405 = shalt.err (!%p402_p1)
}
  0x40   :  { %87 = dma.hbm_to_vmem [thread:$0]  %s546_s5, 256, %s82_s20, [#allocation12], %s438_s26, %s438_s26, %s439_s27  }
  0x41   :  { %426 = dma.done.wait [#allocation3], 256  }
  0x42   :  { %427 = vsyncadd [#allocation3], 4294967040 }
  0x43   :  { %428 = dma.done.wait [#allocation6], 512  }
  0x44   :  { %429 = vsyncadd [#allocation6], 4294966784 }
  0x45   :  { %430 = dma.done.wait [#allocation9], 512  }
  0x46   :  { %431 = vsyncadd [#allocation9], 4294966784 }
  0x47   :  { %432 = dma.done.wait [#allocation12], 256  }
  0x48   :  { %433 = vsyncadd [#allocation12], 4294967040  ;;  %v108_v0 = vld [vmem:[#allocation7] sm:$0xff]  ;;  %v111_v1 = vld [vmem:[#allocation11] sm:$0xff]  ;;  %s444_s4 = smov [#allocation13]  }
  0x49   :  { %v516_v2 = vadd.f32 -5.0, %v108_v0  ;;  %v518_v3 = vadd.f32 -5.0, %v111_v1  ;;  %v168_v4 = vld [vmem:[#allocation7 + $0x8] sm:$0xff]  ;;  %v174_v6 = vld [vmem:[#allocation11 + $0x8] sm:$0xff]  ;;  %s233_s5 = sshll.u32 %s444_s4, 4  ;;  %s234_s5 = int_to_ptr.vmem [resolvable:$true] %s233_s5 }
  0x4a   :  { %v522_v8 = vadd.f32 -5.0, %v168_v4  ;;  %v524_v9 = vadd.f32 -5.0, %v174_v6  ;;  %v107_v6 = vld [vmem:[#allocation5] sm:$0xff]  ;;  %s406_s25 = scalar_lea.vmem %s234_s5, 128  ;;  %p411_p3 = scmp.lt.s32.totalorder %s234_s5, %s234_s5 }
  0x4b   :  { %v114_v5 = vand.u32 2147483647, %v516_v2  ;;  %v131_v7 = vand.u32 2147483647, %v518_v3  ;;  %v113_v41 = vmax.f32 %v516_v2, 0.0  ;;  %v130_v47 = vmax.f32 %v518_v3, 0.0  ;;  %p407_p2 = scmp.ne.s32.totalorder %s234_s5, %s406_s25  ;;  %p412_p4 = scmp.lt.s32.totalorder %s406_s25, %s406_s25 }
  0x4c   :  { %v177_v12 = vand.u32 2147483647, %v522_v8  ;;  %v194_v14 = vand.u32 2147483647, %v524_v9  ;;  %v176_v49 = vmax.f32 %v522_v8, 0.0  ;;  %v193_v53 = vmax.f32 %v524_v9, 0.0 }
  0x4d   :  { %v115_v10 = vsub.f32 0.0, %v114_v5  ;;  %v132_v11 = vsub.f32 0.0, %v131_v7  ;;  %v106_v5 = vld [vmem:[#allocation2] sm:$0xff]  ;;  %v109_v7 = vld [vmem:[#allocation8] sm:$0xff]  ;;  %v164_v9 = vld [vmem:[#allocation2 + $0x8] sm:$0xff]  ;;  %p413_p5 = por %p412_p4, %p411_p3 }
  0x4e   :  { %v178_v16 = vsub.f32 0.0, %v177_v12  ;;  %v195_v17 = vsub.f32 0.0, %v194_v14  ;;  %v110_v8 = vld [vmem:[#allocation10] sm:$0xff]  ;;  %v172_v12 = vld [vmem:[#allocation10 + $0x8] sm:$0xff]  ;;  %v150_v14 = vsub.f32 %v106_v5, %v107_v6 }
  0x4f   :  { %v116_v13 = vmul.f32 1.442695, %v115_v10  ;;  %v133_v15 = vmul.f32 1.442695, %v132_v11  ;;  %v166_v10 = vld [vmem:[#allocation5 + $0x8] sm:$0xff]  ;;  %p414_p6 = pnand %p413_p5, %p407_p2 }
  0x50   :  { %v179_v18 = vmul.f32 1.442695, %v178_v16  ;;  %v196_v19 = vmul.f32 1.442695, %v195_v17  ;;  %v170_v11 = vld [vmem:[#allocation8 + $0x8] sm:$0xff] }
  0x51   :  { %258 = vpow2.f32 %v116_v13 }
  0x52   :  { %260 = vpow2.f32 %v133_v15  ;;  %v152_v15 = vsub.f32 %v109_v7, %v110_v8 }
  0x53   :  { %262 = vpow2.f32 %v179_v18  ;;  %v213_v18 = vsub.f32 %v164_v9, %v166_v10 }
  0x54   :  { %264 = vpow2.f32 %v196_v19  ;;  %v215_v19 = vsub.f32 %v170_v11, %v172_v12 }
  0x5e   :  { %v259_v20 = vpop.eup %258 }
  0x5f   :  { %v261_v21 = vpop.eup %260  ;;  %v118_v22 = vadd.f32 1.0, %v259_v20  ;;  %v121_v28 = vmul.f32 -0.5, %v259_v20  ;;  %v124_v33 = vand.u32 2147483647, %v259_v20 }
  0x60   :  { %v135_v23 = vadd.f32 1.0, %v261_v21  ;;  %v263_v24 = vpop.eup %262  ;;  %v138_v29 = vmul.f32 -0.5, %v261_v21  ;;  %v141_v35 = vand.u32 2147483647, %v261_v21 }
  0x61   :  { %266 = vlog2.f32 %v118_v22  ;;  %v265_v25 = vpop.eup %264  ;;  %v181_v26 = vadd.f32 1.0, %v263_v24  ;;  %v184_v30 = vmul.f32 -0.5, %v263_v24  ;;  %v122_v31 = vadd.f32 1.0, %v121_v28 }
  0x62   :  { %268 = vlog2.f32 %v135_v23  ;;  %v198_v27 = vadd.f32 1.0, %v265_v25  ;;  %v201_v32 = vmul.f32 -0.5, %v265_v25  ;;  %v139_v34 = vadd.f32 1.0, %v138_v29 }
  0x63   :  { %270 = vlog2.f32 %v181_v26  ;;  %v185_v36 = vadd.f32 1.0, %v184_v30  ;;  %v123_v37 = vmul.f32 %v259_v20, %v122_v31  ;;  %v187_v38 = vand.u32 2147483647, %v263_v24 }
  0x64   :  { %272 = vlog2.f32 %v198_v27  ;;  %v202_v39 = vadd.f32 1.0, %v201_v32  ;;  %vm529_vm0 = vcmp.lt.f32.partialorder %v124_v33, 0.0004427343  ;;  %v140_v43 = vmul.f32 %v261_v21, %v139_v34 }
  0x65   :  { %v204_v44 = vand.u32 2147483647, %v265_v25  ;;  %vm142_vm1 = vcmp.lt.f32.partialorder %v141_v35, 0.0004427343  ;;  %v186_v50 = vmul.f32 %v263_v24, %v185_v36  ;;  %vm188_vm2 = vcmp.lt.f32.partialorder %v187_v38, 0.0004427343 }
  0x66   :  { %v203_v54 = vmul.f32 %v265_v25, %v202_v39 }
  0x67   :  { %vm205_vm3 = vcmp.lt.f32.partialorder %v204_v44, 0.0004427343 }
  0x6e   :  { %v267_v40 = vpop.eup %266 }
  0x6f   :  { %v269_v45 = vpop.eup %268  ;;  %v120_v46 = vmul.f32 0.6931472, %v267_v40 }
  0x70   :  { %v137_v48 = vmul.f32 0.6931472, %v269_v45  ;;  %v271_v51 = vpop.eup %270 }
  0x71   :  { %v126_v52 = vsel %vm529_vm0, %v123_v37, %v120_v46  ;;  %v273_v55 = vpop.eup %272  ;;  %v183_v58 = vmul.f32 0.6931472, %v271_v51 }
  0x72   :  { %v127_v56 = vadd.f32 %v126_v52, %v113_v41  ;;  %v143_v57 = vsel %vm142_vm1, %v140_v43, %v137_v48  ;;  %v200_v60 = vmul.f32 0.6931472, %v273_v55 }
  0x73   :  { %v144_v59 = vadd.f32 %v143_v57, %v130_v47  ;;  %v189_v62 = vsel %vm188_vm2, %v186_v50, %v183_v58 }
  0x74   :  { %v128_v61 = vadd.f32 1e-06, %v127_v56  ;;  %v190_v0 = vadd.f32 %v189_v62, %v176_v49  ;;  %v206_v1 = vsel %vm205_vm3, %v203_v54, %v200_v60 }
  0x75   :  { %v145_v63 = vadd.f32 1e-06, %v144_v59  ;;  %v207_v2 = vadd.f32 %v206_v1, %v193_v53 }
  0x76   :  { %274 = vrcp.f32 %v128_v61  ;;  %v191_v3 = vadd.f32 1e-06, %v190_v0 }
  0x77   :  { %276 = vrcp.f32 %v145_v63  ;;  %v208_v4 = vadd.f32 1e-06, %v207_v2 }
  0x78   :  { %278 = vrcp.f32 %v191_v3 }
  0x79   :  { %280 = vrcp.f32 %v208_v4 }
  0x83   :  { %v275_v13 = vpop.eup %274 }
  0x84   :  { %v277_v16 = vpop.eup %276  ;;  %v158_v17 = vmul.f32 %v275_v13, %v145_v63  ;;  %v151_v22 = vmul.f32 %v275_v13, %v150_v14 }
  0x85   :  { %v279_v20 = vpop.eup %278  ;;  %v153_v23 = vmul.f32 %v277_v16, %v152_v15 }
  0x86   :  { %282 = vlog2.f32 %v158_v17  ;;  %v281_v21 = vpop.eup %280  ;;  %v221_v24 = vmul.f32 %v279_v20, %v208_v4  ;;  %v214_v25 = vmul.f32 %v279_v20, %v213_v18  ;;  %v155_v28 = vmul.f32 %v151_v22, %v151_v22 }
  0x87   :  { %v216_v26 = vmul.f32 %v281_v21, %v215_v19  ;;  %v154_v27 = vmul.f32 %v153_v23, %v153_v23 }
  0x88   :  { %284 = vlog2.f32 %v221_v24  ;;  %v218_v30 = vmul.f32 %v214_v25, %v214_v25 }
  0x89   :  { %v217_v29 = vmul.f32 %v216_v26, %v216_v26  ;;  %v156_v31 = vsub.f32 %v154_v27, %v155_v28 }
  0x8b   :  { %v219_v32 = vsub.f32 %v217_v29, %v218_v30  ;;  %v157_v34 = vmul.f32 0.5, %v156_v31 }
  0x8d   :  { %v220_v36 = vmul.f32 0.5, %v219_v32 }
  0x93   :  { %v283_v33 = vpop.eup %282 }
  0x94   :  { %v160_v35 = vmul.f32 0.6931472, %v283_v33 }
  0x95   :  { %v285_v37 = vpop.eup %284 }
  0x96   :  { %v161_v38 = vadd.f32 %v160_v35, %v157_v34  ;;  %v223_v39 = vmul.f32 0.6931472, %v285_v37 }
  0x98   :  { %v224_v40 = vadd.f32 %v223_v39, %v220_v36 }
  0x9a   :  { %v225_v41 = vadd.f32 %v224_v40, %v161_v38 }
  0x9c   :  { %226 = vst [vmem:[#allocation13] sm:$0xff] %v225_v41 }
  0x9d   :  { %417 = shalt.err (!%p414_p6)
}
  0x9e   :  { %236 = dma.vmem_to_hbm [thread:$0]  %s234_s5, 128, %s547_s6, [#allocation4]  }
  0x9f   :  { %434 = dma.done.wait [#allocation4], 128  }
  0xa0   :  { %435 = vsyncadd [#allocation4], 4294967168 }
  0xa1   :  { %240 = vsyncpa [#allocation3], 1 }
  0xa2   :  { %241 = vsyncpa [#allocation6], 1 }
  0xa3   :  { %242 = vsyncpa [#allocation9], 1 }
  0xa4   :  { %243 = vsyncpa [#allocation12], 1 }
  0xa5   :  { %244 = vsyncpa [#allocation4], 1 }

</bundles_post_ra>
